<compile_context>
chip_gen: v5e
topology: v5e:2x2
jax: 0.10.0
libtpu: 0.0.40
codegen_flags: <defaults>
</compile_context>

<pallas_src>
import functools

import jax
import jax.numpy as jnp
from jax import lax
from jax.experimental import pallas as pl
from jax.experimental.pallas import tpu as pltpu


def _rms_norm_kernel(x_ref, scale_ref, o_ref, *, d_x, partial_size, eps, approx_recip):
    # x_ref: (tm, d), scale_ref: (1, d) f32, o_ref: (tm, d)
    x = x_ref[...]
    xf = x.astype(jnp.float32)
    d = x.shape[-1]

    if partial_size is None:
        sq_sum = jnp.sum(xf * xf, axis=-1, keepdims=True)
    elif partial_size % 128 == 0:
        # Lane-aligned static slice: no copy, no mask ops.
        xp = x_ref[:, :partial_size].astype(jnp.float32)
        sq_sum = jnp.sum(xp * xp, axis=-1, keepdims=True)
    else:
        # Non-lane-aligned cut: sum the aligned prefix with a free static
        # slice, and mask only the single trailing 128-lane slab.
        ps_aligned = (partial_size // 128) * 128
        tail_w = min(128, d - ps_aligned)
        tail = x_ref[:, ps_aligned:ps_aligned + tail_w].astype(jnp.float32)
        lane = jax.lax.broadcasted_iota(jnp.int32, tail.shape, dimension=1)
        tail = jnp.where(lane < (partial_size - ps_aligned), tail, 0.0)
        sq_sum = jnp.sum(tail * tail, axis=-1, keepdims=True)
        if ps_aligned > 0:
            xp = x_ref[:, :ps_aligned].astype(jnp.float32)
            sq_sum = sq_sum + jnp.sum(xp * xp, axis=-1, keepdims=True)

    # rms = norm(x) * d_x**-0.5 == sqrt(sum(x^2) / d_x)  (exact algebra);
    # eps is added OUTSIDE the sqrt, matching the torch reference.
    rms = jnp.sqrt(sq_sum * (1.0 / float(d_x)))
    inv = pl.reciprocal(rms + eps, approx=approx_recip)     # (tm, 1) f32, EUP

    # Scale in f32 (v5e has no bf16 VPU; tighter rounding), cast once at store.
    o_ref[...] = (xf * inv * scale_ref[...]).astype(o_ref.dtype)


def _rms_norm_packed_kernel(x_ref, scale_ref, ind_ref, o_ref, *, d, eps, approx_recip):
    # Lane-dense path for d < 128: each 128-lane row packs g = 128 // d
    # logical rows.  x_ref: (tm, 128), scale_ref: (1, 128) f32 (scale tiled g
    # times), ind_ref: (128, 128) f32 block-diagonal group indicator.
    xf = x_ref[...].astype(jnp.float32)
    sq = xf * xf
    # One MXU matmul gives each lane its group's squared-sum, already
    # broadcast back across the group's lanes.  Indicator is exactly 0/1 and
    # accumulation is f32, so HIGHEST precision makes this exact.
    grp_sq_sum = jnp.dot(sq, ind_ref[...],
                         preferred_element_type=jnp.float32,
                         precision=lax.Precision.HIGHEST)
    rms = jnp.sqrt(grp_sq_sum * (1.0 / float(d)))
    inv = pl.reciprocal(rms + eps, approx=approx_recip)
    o_ref[...] = (xf * inv * scale_ref[...]).astype(o_ref.dtype)


def _vmem_budgets():
    """Tile budget / scoped-VMEM limit derived from the chip's VMEM size."""
    cap = None
    try:
        cap = getattr(pltpu.get_tpu_info(), "vmem_capacity_bytes", None)
    except Exception:
        cap = None
    if not cap:
        cap = 64 << 20            # conservative fallback (v7x per-TC VMEM)
    budget = int(cap * 0.35)      # v7x ~22 MiB, v5e/v6e ~45 MiB
    limit = int(cap * 0.60)       # v7x ~38 MiB, v5e/v6e ~77 MiB
    return budget, limit


def _pick_block_rows(rows, d_lanes, itemsize, budget_bytes):
    """Largest row tile (multiple of 8) fitting the VMEM byte budget.

    Per-row estimate: double-buffered input + output tiles (2 bufs x 2 arrays
    x itemsize) plus f32 body temporaries; the explicit f32 upcast of bf16
    inputs is accounted for separately.
    """
    if rows <= 8:
        return int(rows)          # one block equal to the full row extent
    body = 8 + (4 if itemsize < 4 else 0)
    per_row = d_lanes * (4 * itemsize + body)
    tm = max(8, budget_bytes // per_row)
    # Guarantee >= 2 grid steps so the "parallel" axis can shard across the
    # two v7x TensorCores (costs ~0.35us extra on single-TC chips).
    half = ((((rows + 1) // 2) + 7) // 8) * 8
    tm = min(tm, max(8, half))
    tm = min(tm, ((rows + 7) // 8) * 8)
    tm = max(8, (tm // 8) * 8)
    return int(tm)


def rms_norm(x, scale, *, p: float = -1.0, eps: float = 1e-8, block_rows: int | None = None):
    """RMSNorm over the last axis of x.  x: [..., d], scale: [d]."""
    d = x.shape[-1]
    orig_shape = x.shape
    x2 = x.reshape(-1, d)
    rows = x2.shape[0]

    if p < 0.0 or p > 1.0:
        partial_size = None
        d_x = d
    else:
        partial_size = int(d * p)
        if partial_size == 0:
            # torch ref would produce NaN (0 ** -0.5); surface it instead.
            raise ValueError("partial RMSNorm with int(d * p) == 0 is ill-defined")
        d_x = partial_size

    budget, vmem_limit = _vmem_budgets()
    approx_recip = bool(x.dtype == jnp.bfloat16)
    scale_f32 = scale.astype(jnp.float32)
    itemsize = jnp.dtype(x.dtype).itemsize

    # ---- lane-dense packed path for narrow d (full norm only) -------------
    g = 128 // d if (d < 128 and 128 % d == 0) else 0
    if partial_size is None and g > 1 and rows % g == 0:
        rows_p = rows // g
        x_p = x2.reshape(rows_p, 128)
        scale_p = jnp.tile(scale_f32, (g,)).reshape(1, 128)
        lane_i = jnp.arange(128)[:, None] // d
        lane_j = jnp.arange(128)[None, :] // d
        ind = (lane_i == lane_j).astype(jnp.float32)   # block-diagonal 0/1

        tm = (_pick_block_rows(rows_p, 128, itemsize, budget)
              if block_rows is None else block_rows)
        grid = (pl.cdiv(rows_p, tm),)
        kernel = functools.partial(_rms_norm_packed_kernel, d=d, eps=eps,
                                   approx_recip=approx_recip)
        out = pl.pallas_call(
            kernel,
            out_shape=jax.ShapeDtypeStruct((rows_p, 128), x.dtype),
            grid_spec=pltpu.PrefetchScalarGridSpec(
                num_scalar_prefetch=0,
                grid=grid,
                in_specs=[
                    pl.BlockSpec((tm, 128), lambda i: (i, 0)),
                    pl.BlockSpec((1, 128), lambda i: (0, 0)),
                    pl.BlockSpec((128, 128), lambda i: (0, 0)),
                ],
                out_specs=pl.BlockSpec((tm, 128), lambda i: (i, 0)),
            ),
            compiler_params=pltpu.CompilerParams(
                dimension_semantics=("parallel",),
                vmem_limit_bytes=vmem_limit,
            ),
        )(x_p, scale_p, ind)
        return out.reshape(orig_shape)

    # ---- general (row, d) path ---------------------------------------------
    # TODO(synk): for d < 128 that does not divide 128 (or partial norm with
    # narrow d), the output lanes are not dense; production d should be a
    # multiple of 128.
    tm = (_pick_block_rows(rows, d, itemsize, budget)
          if block_rows is None else block_rows)
    grid = (pl.cdiv(rows, tm),)   # tail block is padded; rows are independent
    kernel = functools.partial(_rms_norm_kernel, d_x=d_x,
                               partial_size=partial_size, eps=eps,
                               approx_recip=approx_recip)
    out = pl.pallas_call(
        kernel,
        out_shape=jax.ShapeDtypeStruct((rows, d), x.dtype),
        grid_spec=pltpu.PrefetchScalarGridSpec(
            num_scalar_prefetch=0,
            grid=grid,
            in_specs=[
                pl.BlockSpec((tm, d), lambda i: (i, 0)),
                pl.BlockSpec((1, d), lambda i: (0, 0)),
            ],
            out_specs=pl.BlockSpec((tm, d), lambda i: (i, 0)),
        ),
        compiler_params=pltpu.CompilerParams(
            dimension_semantics=("parallel",),
            vmem_limit_bytes=vmem_limit,
        ),
    )(x2, scale_f32.reshape(1, d))
    return out.reshape(orig_shape)


if __name__ == "__main__":
    # Module config: RMSNorm(d=32) with defaults p=-1.0, eps=1e-8, bias=False.
    # TODO(synk): bias=True path (offset add) not exercised since default is bias=False.
    d = 32
    batch, seq = 2, 8
    eps = 1e-8

    key = jax.random.PRNGKey(0)
    k1, k2, k3 = jax.random.split(key, 3)
    x = jax.random.normal(k1, (batch, seq, d), dtype=jnp.float32)
    scale = jnp.ones((d,), dtype=jnp.float32)  # nn.Parameter(torch.ones(d))

    out = rms_norm(x, scale, p=-1.0, eps=eps)
    jax.block_until_ready(out)

    # Reference check in plain JAX (same math as the torch module).
    norm_x = jnp.linalg.norm(x, axis=-1, keepdims=True)
    rms_x = norm_x * (d ** -0.5)
    ref = scale * (x / (rms_x + eps))
    assert jnp.allclose(out, ref, atol=1e-5, rtol=1e-5), "mismatch vs reference (packed d=32)"

    # Lane-dense d=128 with rows NOT a multiple of the row tile (padded tail)
    # and a non-trivial scale.
    d2 = 128
    x_b = jax.random.normal(k2, (3, 7, d2), dtype=jnp.float32)
    scale_b = jax.random.normal(k3, (d2,), dtype=jnp.float32)
    out_b = rms_norm(x_b, scale_b, p=-1.0, eps=eps)
    jax.block_until_ready(out_b)
    ref_b = scale_b * (x_b / (jnp.linalg.norm(x_b, axis=-1, keepdims=True) * (d2 ** -0.5) + eps))
    assert jnp.allclose(out_b, ref_b, atol=1e-5, rtol=1e-5), "mismatch vs reference (tail)"

    # Partial RMSNorm, lane-aligned cut (static-slice path).
    d3, p3 = 256, 0.5
    x_c = jax.random.normal(k2, (2, 8, d3), dtype=jnp.float32)
    scale_c = jnp.ones((d3,), dtype=jnp.float32)
    out_c = rms_norm(x_c, scale_c, p=p3, eps=eps)
    jax.block_until_ready(out_c)
    ps = int(d3 * p3)
    norm_c = jnp.linalg.norm(x_c[..., :ps], axis=-1, keepdims=True)
    ref_c = scale_c * (x_c / (norm_c * (ps ** -0.5) + eps))
    assert jnp.allclose(out_c, ref_c, atol=1e-5, rtol=1e-5), "mismatch vs reference (partial aligned)"

    # Partial RMSNorm, non-lane-aligned cut (aligned prefix + masked tail slab).
    d4, p4 = 384, 0.4
    x_e = jax.random.normal(k3, (2, 8, d4), dtype=jnp.float32)
    scale_e = jnp.ones((d4,), dtype=jnp.float32)
    out_e = rms_norm(x_e, scale_e, p=p4, eps=eps)
    jax.block_until_ready(out_e)
    ps4 = int(d4 * p4)
    norm_e = jnp.linalg.norm(x_e[..., :ps4], axis=-1, keepdims=True)
    ref_e = scale_e * (x_e / (norm_e * (ps4 ** -0.5) + eps))
    assert jnp.allclose(out_e, ref_e, atol=1e-5, rtol=1e-5), "mismatch vs reference (partial unaligned)"

    # bf16 input path (f32 math, single cast at store; looser tolerance).
    x_d = jax.random.normal(k1, (2, 8, d2), dtype=jnp.float32).astype(jnp.bfloat16)
    scale_d = jnp.ones((d2,), dtype=jnp.float32)
    out_d = rms_norm(x_d, scale_d, p=-1.0, eps=eps)
    jax.block_until_ready(out_d)
    x_d32 = x_d.astype(jnp.float32)
    ref_d = scale_d * (x_d32 / (jnp.linalg.norm(x_d32, axis=-1, keepdims=True) * (d2 ** -0.5) + eps))
    assert jnp.allclose(out_d.astype(jnp.float32), ref_d, atol=5e-2, rtol=5e-2), "mismatch (bf16)"

    print("KERNEL_OK")
</pallas_src>

<mosaic_0001>
module attributes {stable_mosaic.version = 11 : i64} {
  func.func @_rms_norm_packed_kernel(%arg0: i32, %arg1: memref<4x128xf32, #tpu.memory_space<vmem>>, %arg2: memref<1x128xf32, #tpu.memory_space<vmem>>, %arg3: memref<128x128xf32, #tpu.memory_space<vmem>>, %arg4: memref<4x128xf32, #tpu.memory_space<vmem>>) attributes {dimension_semantics = [#tpu.dimension_semantics<parallel>], iteration_bounds = array<i64: 1>, scalar_prefetch = 0 : i64, scratch_operands = 0 : i64, tpu.core_type = #tpu.core_type<tc>, window_params = [{transform_indices = @transform_0, window_bounds = array<i64: 4, 128>}, {pipeline_mode = #tpu.pipeline_mode<synchronous>, transform_indices = @transform_1, window_bounds = array<i64: 1, 128>}, {pipeline_mode = #tpu.pipeline_mode<synchronous>, transform_indices = @transform_2, window_bounds = array<i64: 128, 128>}, {transform_indices = @transform_3, window_bounds = array<i64: 4, 128>}]} {
    %c0 = arith.constant 0 : index
    %c0_0 = arith.constant 0 : index
    %0 = vector.load %arg1[%c0, %c0_0] : memref<4x128xf32, #tpu.memory_space<vmem>>, vector<4x128xf32>
    %1 = arith.mulf %0, %0 : vector<4x128xf32>
    %c0_1 = arith.constant 0 : index
    %c0_2 = arith.constant 0 : index
    %2 = vector.load %arg3[%c0_1, %c0_2] : memref<128x128xf32, #tpu.memory_space<vmem>>, vector<128x128xf32>
    %cst = arith.constant dense<0.000000e+00> : vector<4x128xf32>
    %3 = tpu.matmul %1, %2, %cst {dimension_numbers = #tpu.dot_dimension_numbers<[1], [0], [0], [1], [0, 0, 1, 1], [], []>, precision = #tpu.contract_precision<fp32>} : vector<4x128xf32>, vector<128x128xf32>, vector<4x128xf32> -> vector<4x128xf32>
    %cst_3 = arith.constant 3.125000e-02 : f32
    %4 = vector.broadcast %cst_3 : f32 to vector<4x128xf32>
    %5 = arith.mulf %3, %4 : vector<4x128xf32>
    %6 = math.sqrt %5 : vector<4x128xf32>
    %cst_4 = arith.constant 9.99999993E-9 : f32
    %7 = vector.broadcast %cst_4 : f32 to vector<4x128xf32>
    %8 = arith.addf %6, %7 : vector<4x128xf32>
    %9 = tpu.reciprocal %8 : vector<4x128xf32> -> vector<4x128xf32>
    %10 = arith.mulf %0, %9 : vector<4x128xf32>
    %c0_5 = arith.constant 0 : index
    %c0_6 = arith.constant 0 : index
    %11 = vector.load %arg2[%c0_5, %c0_6] : memref<1x128xf32, #tpu.memory_space<vmem>>, vector<1x128xf32>
    %12 = vector.broadcast %11 : vector<1x128xf32> to vector<4x128xf32>
    %13 = arith.mulf %10, %12 : vector<4x128xf32>
    %c0_7 = arith.constant 0 : index
    %c0_8 = arith.constant 0 : index
    %14 = vector.load %arg4[%c0_7, %c0_8] : memref<4x128xf32, #tpu.memory_space<vmem>>, vector<4x128xf32>
    tpu.vector_store %arg4[%c0_7, %c0_8], %13 {strides = array<i32>} : memref<4x128xf32, #tpu.memory_space<vmem>>, vector<4x128xf32>,
    return
  }
  func.func @transform_0(%arg0: i32) -> (i32, i32) {
    %c0_i32 = arith.constant 0 : i32
    %c0_i32_0 = arith.constant 0 : i32
    return %arg0, %c0_i32 : i32, i32
  }
  func.func @transform_1(%arg0: i32) -> (i32, i32) {
    %c0_i32 = arith.constant 0 : i32
    %c0_i32_0 = arith.constant 0 : i32
    %c0_i32_1 = arith.constant 0 : i32
    return %c0_i32, %c0_i32_0 : i32, i32
  }
  func.func @transform_2(%arg0: i32) -> (i32, i32) {
    %c0_i32 = arith.constant 0 : i32
    %c0_i32_0 = arith.constant 0 : i32
    %c0_i32_1 = arith.constant 0 : i32
    return %c0_i32, %c0_i32_0 : i32, i32
  }
  func.func @transform_3(%arg0: i32) -> (i32, i32) {
    %c0_i32 = arith.constant 0 : i32
    %c0_i32_0 = arith.constant 0 : i32
    return %arg0, %c0_i32 : i32, i32
  }
}

</mosaic_0001>

<bundles_post_ra>
// kernel: tpu_custom_call.1
= control target key start
LH: loop header
LB: loop body
LE: loop exit
PB: predicated region body
PF: predicated region fallthrough
CT: control target
= control target key end

     0   :  { %8 = vsyncpa [#allocation3], 0  ;;  %s864_s0 = inlined_call_operand.hbm [shape: f32[4,128], index: 0, kind: input, shape index: {}]   ;;  %s865_s1 = inlined_call_operand.hbm [shape: f32[1,128], index: 1, kind: input, shape index: {}]   ;;  %s866_s2 = inlined_call_operand.hbm [shape: f32[128,128], index: 2, kind: input, shape index: {}]   ;;  %s867_s3 = inlined_call_operand.hbm [shape: f32[4,128], index: 3, kind: output, shape index: {}]  }
   0x1   :  { %9 = vsyncpa [#allocation6], 0  ;;  %s27_s14 = sshll.u32 %s865_s1, 4  ;;  %s28_s14 = int_to_ptr.hbm [resolvable:$true] %s27_s14 }
   0x2   :  { %10 = vsyncpa [#allocation4], 0  ;;  %s583_s15 = smov [#allocation5]   ;;  %s16_s19 = sshll.u32 %s864_s0, 4  ;;  %s17_s19 = int_to_ptr.hbm [resolvable:$true] %s16_s19 }
   0x3   :  { %s29_s16 = sshll.u32 %s583_s15, 4  ;;  %s584_s20 = smov [#allocation2]   ;;  %s30_s16 = int_to_ptr.vmem [resolvable:$true] %s29_s16 }
   0x4   :  { %32 = dma.hbm_to_vmem [thread:$0]  %s28_s14, 16, %s30_s16, [#allocation6]  }
   0x5   :  { %s18_s21 = sshll.u32 %s584_s20, 4  ;;  %s37_s24 = sshll.u32 %s866_s2, 4  ;;  %s19_s21 = int_to_ptr.vmem [resolvable:$true] %s18_s21  ;;  %s38_s24 = int_to_ptr.hbm [resolvable:$true] %s37_s24 }
   0x6   :  { %21 = dma.hbm_to_vmem [thread:$0]  %s17_s19, 64, %s19_s21, [#allocation3]  }
   0x7   :  { %s585_s1 = smov [#allocation7]   ;;  %s586_s26 = smov 128  }
   0x8   :  { %s39_s25 = sshll.u32 %s585_s1, 4  ;;  %s587_s27 = smov 8   ;;  %s40_s25 = int_to_ptr.vmem [resolvable:$true] %s39_s25 }
   0x9   :  { %45 = dma.hbm_to_vmem [thread:$0]  %s38_s24, 2048, %s40_s25, [#allocation6], %s586_s26, %s586_s26, %s587_s27  }
   0xa   :  { %577 = dma.done.wait [#allocation3], 64  }
   0xb   :  { %578 = vsyncadd [#allocation3], 4294967232 }
   0xc   :  { %579 = dma.done.wait [#allocation6], 2064  }
   0xd   :  { %580 = vsyncadd [#allocation6], 4294965232  ;;  %v75_v0 = vld [vmem:[#allocation7 + $0x78] sm:$0xff]  ;;  %v74_v1 = vld [vmem:[#allocation7 + $0x70] sm:$0xff]  ;;  %s588_s0 = smov [#allocation8]   ;;  %s459_s30 = sshll.u32 %s867_s3, 4  ;;  %s460_s30 = int_to_ptr.hbm [resolvable:$true] %s459_s30 }
   0xe   :  { %v73_v2 = vld [vmem:[#allocation7 + $0x68] sm:$0xff]  ;;  %v618_v3 = vand.u32 4294901760, %v75_v0  ;;  %v620_v4 = vand.u32 4294901760, %v74_v1  ;;  %v72_v6 = vld [vmem:[#allocation7 + $0x60] sm:$0xff]  ;;  %v71_v7 = vld [vmem:[#allocation7 + $0x58] sm:$0xff]  ;;  %s457_s2 = sshll.u32 %s588_s0, 4  ;;  %s458_s2 = int_to_ptr.vmem [resolvable:$true] %s457_s2 }
   0xf   :  { %v622_v5 = vand.u32 4294901760, %v73_v2  ;;  %v70_v8 = vld [vmem:[#allocation7 + $0x50] sm:$0xff]  ;;  %v624_v9 = vand.u32 4294901760, %v72_v6  ;;  %v626_v10 = vand.u32 4294901760, %v71_v7  ;;  %v69_v12 = vld [vmem:[#allocation7 + $0x48] sm:$0xff]  ;;  %v68_v13 = vld [vmem:[#allocation7 + $0x40] sm:$0xff] }
  0x10   :  { %v628_v11 = vand.u32 4294901760, %v70_v8  ;;  %77 = vmatpush.msra.mxu0 %v618_v3  ;;  %v632_v14 = vsub.f32 %v75_v0, %v618_v3  ;;  %v635_v15 = vsub.f32 %v74_v1, %v620_v4  ;;  %v640_v17 = vand.u32 4294901760, %v69_v12  ;;  %v67_v18 = vld [vmem:[#allocation7 + $0x38] sm:$0xff]  ;;  %273 = vmatpush.msra.mxu3 %v618_v3  ;;  %v66_v26 = vld [vmem:[#allocation7 + $0x30] sm:$0xff]  ;;  %v65_v36 = vld [vmem:[#allocation7 + $0x28] sm:$0xff] }
  0x11   :  { %v638_v16 = vsub.f32 %v73_v2, %v622_v5  ;;  %v644_v19 = vsub.f32 %v72_v6, %v624_v9  ;;  %v647_v20 = vsub.f32 %v71_v7, %v626_v10  ;;  %v656_v25 = vand.u32 4294901760, %v68_v13  ;;  %v64_v42 = vld [vmem:[#allocation7 + $0x20] sm:$0xff]  ;;  %v63_v47 = vld [vmem:[#allocation7 + $0x18] sm:$0xff]  ;;  %v62_v55 = vld [vmem:[#allocation7 + $0x10] sm:$0xff] }
  0x12   :  { %v650_v21 = vsub.f32 %v70_v8, %v628_v11  ;;  %79 = vmatpush.msra.mxu0 %v620_v4  ;;  %v119_v22 = vand.u32 4294901760, %v632_v14  ;;  %v125_v23 = vand.u32 4294901760, %v635_v15  ;;  %220 = vmatpush.msra.mxu2 %v632_v14  ;;  %v660_v28 = vand.u32 4294901760, %v67_v18  ;;  %v61_v60 = vld [vmem:[#allocation7 + $0x8] sm:$0xff]  ;;  %v730_v61 = vld [vmem:[#allocation2] sm:$0xf] }
  0x13   :  { %v131_v24 = vand.u32 4294901760, %v638_v16  ;;  %v137_v27 = vand.u32 4294901760, %v644_v19  ;;  %v663_v29 = vsub.f32 %v69_v12, %v640_v17  ;;  %275 = vmatpush.msra.mxu3 %v620_v4  ;;  %v143_v33 = vand.u32 4294901760, %v647_v20  ;;  %v60_v2 = vld [vmem:[#allocation7] sm:$0xff] }
  0x14   :  { %81 = vmatpush.msra.mxu0 %v622_v5  ;;  %v120_v30 = vsub.f32 %v632_v14, %v119_v22  ;;  %v126_v31 = vsub.f32 %v635_v15, %v125_v23  ;;  %223 = vmatpush.msra.mxu2 %v635_v15  ;;  %v149_v34 = vand.u32 4294901760, %v650_v21  ;;  %v679_v35 = vand.u32 4294901760, %v66_v26 }
  0x15   :  { %v132_v32 = vsub.f32 %v638_v16, %v131_v24  ;;  %277 = vmatpush.msra.mxu3 %v622_v5  ;;  %v138_v39 = vsub.f32 %v644_v19, %v137_v27  ;;  %v687_v40 = vsub.f32 %v68_v13, %v656_v25  ;;  %v155_v41 = vand.u32 4294901760, %v663_v29 }
  0x16   :  { %v121_v37 = vand.u32 4294901760, %v120_v30  ;;  %83 = vmatpush.msra.mxu0 %v624_v9  ;;  %v127_v38 = vand.u32 4294901760, %v126_v31  ;;  %226 = vmatpush.msra.mxu2 %v638_v16  ;;  %v144_v44 = vsub.f32 %v647_v20, %v143_v33  ;;  %v696_v45 = vand.u32 4294901760, %v65_v36 }
  0x17   :  { %279 = vmatpush.msra.mxu3 %v624_v9  ;;  %v133_v43 = vand.u32 4294901760, %v132_v32  ;;  %v699_v46 = vsub.f32 %v67_v18, %v660_v28  ;;  %v161_v48 = vand.u32 4294901760, %v687_v40  ;;  %v139_v49 = vand.u32 4294901760, %v138_v39 }
  0x18   :  { %122 = vmatpush.msra.mxu1 %v121_v37  ;;  %85 = vmatpush.msra.mxu0 %v626_v10  ;;  %v150_v50 = vsub.f32 %v650_v21, %v149_v34  ;;  %v708_v51 = vand.u32 4294901760, %v64_v42  ;;  %v711_v52 = vsub.f32 %v66_v26, %v679_v35  ;;  %v156_v53 = vsub.f32 %v663_v29, %v155_v41 }
  0x19   :  { %229 = vmatpush.msra.mxu2 %v644_v19  ;;  %281 = vmatpush.msra.mxu3 %v626_v10  ;;  %v716_v54 = vand.u32 4294901760, %v63_v47  ;;  %v145_v56 = vand.u32 4294901760, %v144_v44  ;;  %v167_v57 = vand.u32 4294901760, %v699_v46  ;;  %v723_v58 = vsub.f32 %v65_v36, %v696_v45 }
  0x1a   :  { %128 = vmatpush.msra.mxu1 %v127_v38  ;;  %87 = vmatpush.msra.mxu0 %v628_v11  ;;  %v162_v59 = vsub.f32 %v687_v40, %v161_v48  ;;  %v151_v62 = vand.u32 4294901760, %v150_v50  ;;  %v173_v63 = vand.u32 4294901760, %v711_v52  ;;  %v734_v0 = vand.u32 4294901760, %v62_v55 }
  0x1b   :  { %232 = vmatpush.msra.mxu2 %v647_v20  ;;  %283 = vmatpush.msra.mxu3 %v628_v11  ;;  %v737_v1 = vsub.f32 %v64_v42, %v708_v51  ;;  %v157_v6 = vand.u32 4294901760, %v156_v53  ;;  %v740_v7 = vsub.f32 %v63_v47, %v716_v54  ;;  %v168_v8 = vsub.f32 %v699_v46, %v167_v57 }
  0x1c   :  { %134 = vmatpush.msra.mxu1 %v133_v43  ;;  %89 = vmatpush.msra.mxu0 %v640_v17  ;;  %v179_v12 = vand.u32 4294901760, %v723_v58  ;;  %v749_v13 = vand.u32 4294901760, %v61_v60  ;;  %v59_v18 = vmul.f32 %v730_v61, %v730_v61  ;;  %v163_v26 = vand.u32 4294901760, %v162_v59 }
  0x1d   :  { %235 = vmatpush.msra.mxu2 %v650_v21  ;;  %285 = vmatpush.msra.mxu3 %v640_v17  ;;  %v753_v30 = vand.u32 4294901760, %v60_v2  ;;  %v174_v31 = vsub.f32 %v711_v52, %v173_v63  ;;  %v185_v32 = vand.u32 4294901760, %v737_v1  ;;  %v763_v36 = vsub.f32 %v62_v55, %v734_v0 }
  0x1e   :  { %140 = vmatpush.msra.mxu1 %v139_v49  ;;  %91 = vmatpush.msra.mxu0 %v656_v25  ;;  %v765_v37 = vand.u32 4294901760, %v59_v18  ;;  %v191_v38 = vand.u32 4294901760, %v740_v7  ;;  %v169_v39 = vand.u32 4294901760, %v168_v8  ;;  %v180_v42 = vsub.f32 %v723_v58, %v179_v12 }
  0x1f   :  { %238 = vmatpush.msra.mxu2 %v663_v29  ;;  %287 = vmatpush.msra.mxu3 %v656_v25  ;;  %v775_v43 = vsub.f32 %v61_v60, %v749_v13  ;;  %v175_v47 = vand.u32 4294901760, %v174_v31  ;;  %v186_v49 = vsub.f32 %v737_v1, %v185_v32  ;;  %v197_v50 = vand.u32 4294901760, %v763_v36 }
  0x20   :  { %146 = vmatpush.msra.mxu1 %v145_v56  ;;  %93 = vmatpush.msra.mxu0 %v660_v28  ;;  %v109_v44 = vsub.f32 %v59_v18, %v765_v37  ;;  %v786_v53 = vsub.f32 %v60_v2, %v753_v30  ;;  %v181_v55 = vand.u32 4294901760, %v180_v42  ;;  %v192_v56 = vsub.f32 %v740_v7, %v191_v38 }
  0x21   :  { %241 = vmatpush.msra.mxu2 %v687_v40  ;;  %289 = vmatpush.msra.mxu3 %v660_v28  ;;  %v203_v59 = vand.u32 4294901760, %v775_v43  ;;  %v198_v2 = vsub.f32 %v763_v36, %v197_v50 }
  0x22   :  { %152 = vmatpush.msra.mxu1 %v151_v62  ;;  %95 = vmatpush.msra.mxu0 %v679_v35  ;;  %v110_v60 = vand.u32 4294901760, %v109_v44  ;;  %v187_v62 = vand.u32 4294901760, %v186_v49  ;;  %v193_v8 = vand.u32 4294901760, %v192_v56 }
  0x23   :  { %244 = vmatpush.msra.mxu2 %v699_v46  ;;  %291 = vmatpush.msra.mxu3 %v679_v35  ;;  %v204_v18 = vsub.f32 %v775_v43, %v203_v59  ;;  %v199_v31 = vand.u32 4294901760, %v198_v2 }
  0x24   :  { %158 = vmatpush.msra.mxu1 %v157_v6  ;;  %97 = vmatpush.msra.mxu0 %v696_v45  ;;  %v209_v6 = vand.u32 4294901760, %v786_v53 }
  0x25   :  { %247 = vmatpush.msra.mxu2 %v711_v52  ;;  %293 = vmatpush.msra.mxu3 %v696_v45  ;;  %v205_v42 = vand.u32 4294901760, %v204_v18 }
  0x26   :  { %164 = vmatpush.msra.mxu1 %v163_v26  ;;  %99 = vmatpush.msra.mxu0 %v708_v51  ;;  %v111_v26 = vsub.f32 %v109_v44, %v110_v60 }
  0x27   :  { %250 = vmatpush.msra.mxu2 %v723_v58  ;;  %295 = vmatpush.msra.mxu3 %v708_v51  ;;  %v476_v58 = vld [vmem:[#allocation5] ss:$0 sm:$0xff] }
  0x28   :  { %170 = vmatpush.msra.mxu1 %v169_v39  ;;  %101 = vmatpush.msra.mxu0 %v716_v54  ;;  %v210_v39 = vsub.f32 %v786_v53, %v209_v6 }
  0x29   :  { %253 = vmatpush.msra.mxu2 %v737_v1  ;;  %297 = vmatpush.msra.mxu3 %v716_v54 }
  0x2a   :  { %176 = vmatpush.msra.mxu1 %v175_v47  ;;  %103 = vmatpush.msra.mxu0 %v734_v0  ;;  %v112_v47 = vand.u32 4294901760, %v111_v26  ;;  %v211_v49 = vand.u32 4294901760, %v210_v39 }
  0x2b   :  { %256 = vmatpush.msra.mxu2 %v740_v7  ;;  %299 = vmatpush.msra.mxu3 %v734_v0 }
  0x2c   :  { %182 = vmatpush.msra.mxu1 %v181_v55  ;;  %105 = vmatpush.msra.mxu0 %v749_v13 }
  0x2d   :  { %259 = vmatpush.msra.mxu2 %v763_v36  ;;  %301 = vmatpush.msra.mxu3 %v749_v13 }
  0x2e   :  { %188 = vmatpush.msra.mxu1 %v187_v62  ;;  %107 = vmatpush.msra.mxu0 %v753_v30 }
  0x2f   :  { %262 = vmatpush.msra.mxu2 %v775_v43  ;;  %303 = vmatpush.msra.mxu3 %v753_v30 }
  0x30   :  { %314 = vmatpush.msrb.mxu0 %v119_v22  ;;  %194 = vmatpush.msra.mxu1 %v193_v8 }
  0x31   :  { %265 = vmatpush.msra.mxu2 %v786_v53  ;;  %307 = vmatmul.f32.vlgmr.msra.gmra.mxu3 %v110_v60 }
  0x32   :  { %318 = vmatpush.msrb.mxu0 %v125_v23  ;;  %200 = vmatpush.msra.mxu1 %v199_v31 }
  0x33   :  { %268 = vmatmul.f32.vlgmr.msra.gmra.mxu2 %v109_v44  ;;  %113 = vmatmul.f32.vlgmr.msra.gmra.mxu0 %v112_v47 }
  0x34   :  { %322 = vmatpush.msrb.mxu0 %v131_v24  ;;  %206 = vmatpush.msra.mxu1 %v205_v42 }
  0x36   :  { %326 = vmatpush.msrb.mxu0 %v137_v27  ;;  %212 = vmatpush.msra.mxu1 %v211_v49 }
  0x37   :  { %214 = vmatmul.f32.vlgmr.msra.gmra.mxu1 %v765_v37 }
  0x38   :  { %381 = vmatpush.msrb.mxu1 %v618_v3  ;;  %330 = vmatpush.msrb.mxu0 %v143_v33 }
  0x3a   :  { %383 = vmatpush.msrb.mxu1 %v620_v4  ;;  %334 = vmatpush.msrb.mxu0 %v149_v34 }
  0x3c   :  { %385 = vmatpush.msrb.mxu1 %v622_v5  ;;  %338 = vmatpush.msrb.mxu0 %v155_v41 }
  0x3e   :  { %387 = vmatpush.msrb.mxu1 %v624_v9  ;;  %342 = vmatpush.msrb.mxu0 %v161_v48 }
  0x40   :  { %389 = vmatpush.msrb.mxu1 %v626_v10  ;;  %346 = vmatpush.msrb.mxu0 %v167_v57 }
  0x42   :  { %391 = vmatpush.msrb.mxu1 %v628_v11  ;;  %350 = vmatpush.msrb.mxu0 %v173_v63 }
  0x44   :  { %393 = vmatpush.msrb.mxu1 %v640_v17  ;;  %354 = vmatpush.msrb.mxu0 %v179_v12 }
  0x46   :  { %395 = vmatpush.msrb.mxu1 %v656_v25  ;;  %358 = vmatpush.msrb.mxu0 %v185_v32 }
  0x48   :  { %397 = vmatpush.msrb.mxu1 %v660_v28  ;;  %362 = vmatpush.msrb.mxu0 %v191_v38 }
  0x4a   :  { %399 = vmatpush.msrb.mxu1 %v679_v35  ;;  %366 = vmatpush.msrb.mxu0 %v197_v50 }
  0x4c   :  { %401 = vmatpush.msrb.mxu1 %v696_v45  ;;  %370 = vmatpush.msrb.mxu0 %v203_v59 }
  0x4e   :  { %403 = vmatpush.msrb.mxu1 %v708_v51  ;;  %374 = vmatpush.msrb.mxu0 %v209_v6 }
  0x4f   :  { %376 = vmatmul.f32.vlgmr.msrb.gmra.mxu0 %v765_v37 }
  0x50   :  { %405 = vmatpush.msrb.mxu1 %v716_v54 }
  0x52   :  { %407 = vmatpush.msrb.mxu1 %v734_v0 }
  0x54   :  { %409 = vmatpush.msrb.mxu1 %v749_v13 }
  0x56   :  { %411 = vmatpush.msrb.mxu1 %v753_v30 }
  0x57   :  { %413 = vmatmul.f32.vlgmr.msrb.gmra.mxu1 %v765_v37 }
  0xb0   :  { %v114_v4 = vpop.f32.mrf.mxu0 }
  0xb4   :  { %v215_v3 = vpop.f32.mrf.mxu1  ;;  %v308_v11 = vpop.f32.mrf.mxu3 }
  0xb5   :  { %v216_v5 = vadd.f32 %v215_v3, %v114_v4 }
  0xb6   :  { %v269_v9 = vpop.f32.mrf.mxu2 }
  0xb7   :  { %v270_v10 = vadd.f32 %v269_v9, %v216_v5 }
  0xb9   :  { %v309_v14 = vadd.f32 %v308_v11, %v270_v10 }
  0xcc   :  { %v377_v15 = vpop.f32.mrf.mxu0 }
  0xcd   :  { %v378_v16 = vadd.f32 %v377_v15, %v309_v14 }
  0xd4   :  { %v414_v17 = vpop.f32.mrf.mxu1 }
  0xd5   :  { %v415_v19 = vadd.f32 %v414_v17, %v378_v16 }
  0xd7   :  { %v417_v20 = vmul.f32 0.03125, %v415_v19 }
  0xd9   :  { %477 = vrsqrt.f32 %v417_v20  ;;  %vm425_vm0 = vcmp.eq.f32.partialorder %v417_v20, inf  ;;  %v428_v29 = vand.u32 2147483648, %v417_v20  ;;  %vm427_vm1 = vcmp.eq.f32.partialorder %v417_v20, 0.0 }
  0xdf   :  { %v478_v21 = vpop.eup %477 }
  0xe0   :  { %v419_v22 = vmul.f32 %v478_v21, %v417_v20 }
  0xe2   :  { %v420_v23 = vmul.f32 %v478_v21, %v419_v22 }
  0xe4   :  { %v421_v24 = vmul.f32 0.5, %v420_v23 }
  0xe6   :  { %v422_v25 = vsub.f32 1.5, %v421_v24 }
  0xe8   :  { %v423_v27 = vmul.f32 %v478_v21, %v422_v25 }
  0xea   :  { %v424_v28 = vmul.f32 %v423_v27, %v417_v20 }
  0xec   :  { %v426_v33 = vsel %vm425_vm0, %v417_v20, %v424_v28 }
  0xed   :  { %v429_v34 = vsel %vm427_vm1, %v428_v29, %v426_v33 }
  0xee   :  { %v430_v35 = vadd.f32 1e-08, %v429_v34 }
  0xf0   :  { %479 = vrcp.f32 %v430_v35  ;;  %v442_v46 = vand.u32 2147483648, %v430_v35  ;;  %v440_v51 = vand.u32 2147483647, %v430_v35  ;;  %vm436_vm3 = vweird.f32 %v430_v35 }
  0xf2   :  { %v443_v54 = vor.u32 1.1754944e-38, %v442_v46  ;;  %vm441_vm5 = vcmp.eq.f32.partialorder %v440_v51, 8.507059e+37 }
  0xf6   :  { %v480_v40 = vpop.eup %479 }
  0xf7   :  { %v432_v41 = vmul.f32 %v480_v40, %v430_v35  ;;  %vm437_vm2 = vweird.f32 %v480_v40 }
  0xf8   :  { %vm438_vm4 = vmor %vm436_vm3, %vm437_vm2 }
  0xf9   :  { %v433_v45 = vsub.f32 1.0, %v432_v41 }
  0xfb   :  { %v434_v48 = vmul.f32 %v480_v40, %v433_v45 }
  0xfd   :  { %v435_v52 = vadd.f32 %v480_v40, %v434_v48 }
  0xff   :  { %v439_v57 = vsel %vm438_vm4, %v480_v40, %v435_v52 }
 0x100   :  { %v444_v63 = vsel %vm441_vm5, %v443_v54, %v439_v57 }
 0x101   :  { %v445_v0 = vmul.f32 %v444_v63, %v730_v61 }
 0x103   :  { %v450_v1 = vmul.f32 %v476_v58, %v445_v0 }
 0x105   :  { %451 = vst [vmem:[#allocation8] sm:$0xf] %v450_v1 }
 0x106   :  { %462 = dma.vmem_to_hbm [thread:$0]  %s458_s2, 64, %s460_s30, [#allocation4]  }
 0x107   :  { %581 = dma.done.wait [#allocation4], 64  }
 0x108   :  { %582 = vsyncadd [#allocation4], 4294967232 }
 0x109   :  { %467 = vsyncpa [#allocation3], 1 }
 0x10a   :  { %468 = vsyncpa [#allocation6], 1 }
 0x10b   :  { %469 = vsyncpa [#allocation4], 1 }

</bundles_post_ra>
